<compile_context>
chip_gen: v6e
topology: v6e:2x2x1
jax: 0.10.0
libtpu: 0.0.40
codegen_flags: <defaults>
</compile_context>

<pallas_src>
import functools

import jax
import jax.numpy as jnp
from jax.experimental import pallas as pl
from jax.experimental.pallas import tpu as pltpu


def _conv_gemm_kernel(w_ref, p_ref, b_ref, o_ref):
    # w_ref: (Cout, Kdim_pad) bf16, resident across the grid
    # p_ref: (Kdim_pad, tm)   bf16 im2col columns for this M tile
    # b_ref: (Cout, 1)        f32, resident
    # o_ref: (Cout, tm)       lane-dense output tile
    acc = jnp.dot(w_ref[...], p_ref[...], preferred_element_type=jnp.float32)
    acc = acc + b_ref[...]
    o_ref[...] = jnp.maximum(acc, 0.0).astype(o_ref.dtype)


@functools.partial(jax.jit, static_argnames=("stride", "padding", "tm"))
def conv3d_relu(x, w, b, *, stride=1, padding=0, tm=512):
    """x: (N, Cin, D, H, W); w: (Cout, Cin, K, K, K); b: (Cout,)."""
    N, Cin, D, H, W = x.shape
    Cout, _, K, _, _ = w.shape

    Do = (D + 2 * padding - K) // stride + 1
    Ho = (H + 2 * padding - K) // stride + 1
    Wo = (W + 2 * padding - K) // stride + 1
    M = N * Do * Ho * Wo
    Kdim = K * K * K * Cin

    # --- glue: NCDHW -> NDHWC, pad, im2col in transposed (Kdim, M) layout ---
    x_ndhwc = jnp.transpose(x, (0, 2, 3, 4, 1))
    xp = jnp.pad(
        x_ndhwc,
        ((0, 0), (padding, padding), (padding, padding), (padding, padding), (0, 0)),
    )
    slabs = []
    for kd in range(K):
        for kh in range(K):
            for kw in range(K):
                slabs.append(
                    xp[:, kd:kd + stride * Do:stride,
                          kh:kh + stride * Ho:stride,
                          kw:kw + stride * Wo:stride, :]
                )
    patches = jnp.stack(slabs, axis=0)        # (K^3, N, Do, Ho, Wo, Cin)
    patches = jnp.moveaxis(patches, -1, 1)    # (K^3, Cin, N, Do, Ho, Wo)
    patches = patches.reshape(Kdim, M)        # rows=(kd,kh,kw,ci), cols=(n,do,ho,wo)

    # weight (Cout, Cin, Kd, Kh, Kw) -> (Cout, Kd, Kh, Kw, Cin) -> (Cout, Kdim)
    w_mat = jnp.transpose(w, (0, 2, 3, 4, 1)).reshape(Cout, Kdim)
    b_mat = b.reshape(Cout, 1).astype(jnp.float32)

    # --- pad to lane/MXU-friendly shapes, cast the GEMM operands to bf16 ----
    Kdim_pad = max(128, ((Kdim + 127) // 128) * 128)
    tm = max(128, min((tm // 128) * 128, ((M + 127) // 128) * 128))  # multiple of 128
    Mp = ((M + tm - 1) // tm) * tm

    patches = jnp.pad(patches, ((0, Kdim_pad - Kdim), (0, Mp - M))).astype(jnp.bfloat16)
    w_mat = jnp.pad(w_mat, ((0, 0), (0, Kdim_pad - Kdim))).astype(jnp.bfloat16)

    cost = pl.CostEstimate(
        flops=2 * Mp * Kdim_pad * Cout,
        transcendentals=0,
        bytes_accessed=(patches.size * 2 + w_mat.size * 2
                        + b_mat.size * 4 + Cout * Mp * 4),
    )

    # --- hot path: fused GEMM + bias + ReLU, lane-dense in/out --------------
    out_cm = pl.pallas_call(
        _conv_gemm_kernel,
        out_shape=jax.ShapeDtypeStruct((Cout, Mp), x.dtype),
        grid_spec=pltpu.PrefetchScalarGridSpec(
            num_scalar_prefetch=0,
            grid=(Mp // tm,),
            in_specs=[
                pl.BlockSpec((Cout, Kdim_pad), lambda i: (0, 0)),   # resident weight
                pl.BlockSpec((Kdim_pad, tm), lambda i: (0, i)),     # streamed patches
                pl.BlockSpec((Cout, 1), lambda i: (0, 0)),          # resident bias
            ],
            out_specs=pl.BlockSpec((Cout, tm), lambda i: (0, i)),
        ),
        compiler_params=pltpu.CompilerParams(
            dimension_semantics=("parallel",),
        ),
        cost_estimate=cost,
    )(w_mat, patches, b_mat)

    # --- glue: (Cout, M) channel-major -> NCDHW ------------------------------
    out = out_cm[:, :M].reshape(Cout, N, Do, Ho, Wo)
    return jnp.transpose(out, (1, 0, 2, 3, 4))


if __name__ == "__main__":
    # Module config: conv3D(in_channels=4, out_channels=8, kernel_size=3, padding=1)
    in_channels, out_channels, kernel_size, padding, stride = 4, 8, 3, 1, 1
    N, D, H, W = 2, 8, 8, 8

    key = jax.random.PRNGKey(0)
    kx, kwt, kb = jax.random.split(key, 3)

    x = jax.random.normal(kx, (N, in_channels, D, H, W), dtype=jnp.float32)
    fan_in = in_channels * kernel_size ** 3
    bound = 1.0 / (fan_in ** 0.5)
    w = jax.random.uniform(
        kwt, (out_channels, in_channels, kernel_size, kernel_size, kernel_size),
        minval=-bound, maxval=bound, dtype=jnp.float32)
    b = jax.random.uniform(kb, (out_channels,), minval=-bound, maxval=bound,
                           dtype=jnp.float32)

    out = conv3d_relu(x, w, b, stride=stride, padding=padding)
    out = jax.block_until_ready(out)

    # Reference: same bf16-rounded inputs, f32 accumulation (matches kernel math),
    # via XLA conv + bias + ReLU — semantics of nn.Conv3d + nn.ReLU (+ identity dropout).
    x_r = x.astype(jnp.bfloat16).astype(jnp.float32)
    w_r = w.astype(jnp.bfloat16).astype(jnp.float32)
    ref = jax.lax.conv_general_dilated(
        x_r, w_r, window_strides=(stride,) * 3,
        padding=[(padding, padding)] * 3,
        dimension_numbers=("NCDHW", "OIDHW", "NCDHW"),
        preferred_element_type=jnp.float32,
        precision=jax.lax.Precision.HIGHEST,
    )
    ref = jnp.maximum(ref + b.reshape(1, -1, 1, 1, 1), 0.0)

    assert out.shape == ref.shape, (out.shape, ref.shape)
    assert jnp.allclose(out, ref, atol=2e-3, rtol=2e-3), \
        float(jnp.max(jnp.abs(out - ref)))

    print("KERNEL_OK")
</pallas_src>

<mosaic_0001>
module attributes {stable_mosaic.version = 11 : i64} {
  func.func @_conv_gemm_kernel(%arg0: i32, %arg1: memref<8x128xbf16, #tpu.memory_space<vmem>>, %arg2: memref<128x512xbf16, #tpu.memory_space<vmem>>, %arg3: memref<8x1xf32, #tpu.memory_space<vmem>>, %arg4: memref<8x512xf32, #tpu.memory_space<vmem>>) attributes {dimension_semantics = [#tpu.dimension_semantics<parallel>], iteration_bounds = array<i64: 2>, scalar_prefetch = 0 : i64, scratch_operands = 0 : i64, tpu.core_type = #tpu.core_type<tc>, window_params = [{pipeline_mode = #tpu.pipeline_mode<synchronous>, transform_indices = @transform_0, window_bounds = array<i64: 8, 128>}, {transform_indices = @transform_1, window_bounds = array<i64: 128, 512>}, {pipeline_mode = #tpu.pipeline_mode<synchronous>, transform_indices = @transform_2, window_bounds = array<i64: 8, 1>}, {transform_indices = @transform_3, window_bounds = array<i64: 8, 512>}]} {
    %c0 = arith.constant 0 : index
    %c0_0 = arith.constant 0 : index
    %0 = vector.load %arg1[%c0, %c0_0] : memref<8x128xbf16, #tpu.memory_space<vmem>>, vector<8x128xbf16>
    %c0_1 = arith.constant 0 : index
    %c0_2 = arith.constant 0 : index
    %1 = vector.load %arg2[%c0_1, %c0_2] : memref<128x512xbf16, #tpu.memory_space<vmem>>, vector<128x512xbf16>
    %cst = arith.constant dense<0.000000e+00> : vector<8x512xf32>
    %2 = tpu.matmul %0, %1, %cst {dimension_numbers = #tpu.dot_dimension_numbers<[1], [0], [0], [1], [0, 0, 1, 1], [], []>} : vector<8x128xbf16>, vector<128x512xbf16>, vector<8x512xf32> -> vector<8x512xf32>
    %c0_3 = arith.constant 0 : index
    %c0_4 = arith.constant 0 : index
    %3 = vector.load %arg3[%c0_3, %c0_4] : memref<8x1xf32, #tpu.memory_space<vmem>>, vector<8x1xf32>
    %4 = vector.broadcast %3 : vector<8x1xf32> to vector<8x512xf32>
    %5 = arith.addf %2, %4 : vector<8x512xf32>
    %cst_5 = arith.constant 0.000000e+00 : f32
    %6 = vector.broadcast %cst_5 : f32 to vector<8x512xf32>
    %7 = arith.maximumf %5, %6 : vector<8x512xf32>
    %c0_6 = arith.constant 0 : index
    %c0_7 = arith.constant 0 : index
    %8 = vector.load %arg4[%c0_6, %c0_7] : memref<8x512xf32, #tpu.memory_space<vmem>>, vector<8x512xf32>
    tpu.vector_store %arg4[%c0_6, %c0_7], %7 {strides = array<i32>} : memref<8x512xf32, #tpu.memory_space<vmem>>, vector<8x512xf32>,
    return
  }
  func.func @transform_0(%arg0: i32) -> (i32, i32) {
    %c0_i32 = arith.constant 0 : i32
    %c0_i32_0 = arith.constant 0 : i32
    %c0_i32_1 = arith.constant 0 : i32
    return %c0_i32, %c0_i32_0 : i32, i32
  }
  func.func @transform_1(%arg0: i32) -> (i32, i32) {
    %c0_i32 = arith.constant 0 : i32
    %c0_i32_0 = arith.constant 0 : i32
    return %c0_i32, %arg0 : i32, i32
  }
  func.func @transform_2(%arg0: i32) -> (i32, i32) {
    %c0_i32 = arith.constant 0 : i32
    %c0_i32_0 = arith.constant 0 : i32
    %c0_i32_1 = arith.constant 0 : i32
    return %c0_i32, %c0_i32_0 : i32, i32
  }
  func.func @transform_3(%arg0: i32) -> (i32, i32) {
    %c0_i32 = arith.constant 0 : i32
    %c0_i32_0 = arith.constant 0 : i32
    return %c0_i32, %arg0 : i32, i32
  }
}

</mosaic_0001>

<bundles_post_ra>
// kernel: conv3d_relu.1
= control target key start
LH: loop header
LB: loop body
LE: loop exit
PB: predicated region body
PF: predicated region fallthrough
CT: control target
= control target key end

     0   :  { %s772_s12 = smov 0   ;;  %s774_s13 = smov 0   ;;  %s932_s0 = inlined_call_operand.vmem [shape: bf16[8,128], index: 0, kind: input, shape index: {}]   ;;  %s933_s1 = inlined_call_operand.vmem [shape: bf16[128,1024], index: 1, kind: input, shape index: {}]   ;;  %s934_s2 = inlined_call_operand.vmem [shape: f32[8,1], index: 2, kind: input, shape index: {}]   ;;  %s935_s3 = inlined_call_operand.vmem [shape: f32[8,1024], index: 3, kind: output, shape index: {}]  }
   0x1   :  { %s776_s14 = smov 0  }
   0x2 LB: > { %s607_s15 = sadd.s32 4294967295, %s749_s14   ;;  %s789_s16 = sadd.s32 1, %s749_s14   ;;  %s749_s14 = sphi %s776_s14, %s938_s14   ;;  %s745_s13 = sphi %s774_s13, %s937_s13   ;;  %s741_s12 = sphi %s772_s12, %s936_s12  }
   0x3   : > { %s38_s17 = ssub.s32 %s749_s14, %s789_s16  ;;  %s41_s18 = sadd.s32 1, %s745_s13 }
   0x4   : > { %p39_p0 = scmp.eq.s32.totalorder %s38_s17, 0  ;;  %p48_p1 = scmp.ne.s32.totalorder %s745_s13, %s741_s12 }
   0x5   : > { %p49_p2 = scmp.eq.s32.totalorder %s749_s14, 0  ;;  %p610_p4 = scmp.ge.s32.totalorder %s749_s14, 2 }
   0x6   : > { %s798_s19 = scalar_select %p39_p0, %s745_s13, %s41_s18  }
   0x7   : > { %p50_p3 = por %p49_p2, %p48_p1  ;;  %127 = sbr.rel (%p610_p4) target bundleno = 32 (0x20), region = 24 }
   0xc   : > { %130 = sbr.rel (!%p50_p3) target bundleno = 32 (0x20), region = 28  ;;  %s132_s20 = sand.u32 (%p50_p3), 1, %s745_s13  }
   0xd   : > { %s652_s21 = sshll.u32 (%p50_p3), %s749_s14, 4  ;;  %s611_s22 = sshll.u32 (%p50_p3), %s132_s20, 8 }
   0xe   : > { %s806_s25 = scalar_lea.vmem (%p50_p3), %s933_s1, %s652_s21  ;;  %s811_s26 = scalar_lea.vmem (%p50_p3), [#allocation2], %s611_s22 }
   0xf   : > { %v150_v0 = vld [vmem:[%s806_s25] sm:$0xff] (%p50_p3)  ;;  %v152_v1 = vld [vmem:[%s806_s25 + $0x8] sm:$0xff] (%p50_p3) }
  0x10   : > { %v154_v2 = vld [vmem:[%s806_s25 + $0x20] sm:$0xff] (%p50_p3)  ;;  %151 = vst [vmem:[%s811_s26] sm:$0xff] (%p50_p3), %v150_v0  ;;  %153 = vst [vmem:[%s811_s26 + $0x8] sm:$0xff] (%p50_p3), %v152_v1  ;;  %v156_v3 = vld [vmem:[%s806_s25 + $0x28] sm:$0xff] (%p50_p3) }
  0x11   : > { %155 = vst [vmem:[%s811_s26 + $0x10] sm:$0xff] %v154_v2  ;;  %v158_v4 = vld [vmem:[%s806_s25 + $0x40] sm:$0xff]  ;;  %v160_v5 = vld [vmem:[%s806_s25 + $0x48] sm:$0xff]  ;;  %157 = vst [vmem:[%s811_s26 + $0x18] sm:$0xff] %v156_v3 }
  0x12   : > { %159 = vst [vmem:[%s811_s26 + $0x20] sm:$0xff] %v158_v4  ;;  %161 = vst [vmem:[%s811_s26 + $0x28] sm:$0xff] %v160_v5  ;;  %v162_v6 = vld [vmem:[%s806_s25 + $0x60] sm:$0xff]  ;;  %v164_v7 = vld [vmem:[%s806_s25 + $0x68] sm:$0xff] }
  0x13   : > { %v166_v8 = vld [vmem:[%s806_s25 + $0x80] sm:$0xff]  ;;  %163 = vst [vmem:[%s811_s26 + $0x30] sm:$0xff] %v162_v6  ;;  %165 = vst [vmem:[%s811_s26 + $0x38] sm:$0xff] %v164_v7  ;;  %v168_v9 = vld [vmem:[%s806_s25 + $0x88] sm:$0xff] }
  0x14   : > { %167 = vst [vmem:[%s811_s26 + $0x40] sm:$0xff] %v166_v8  ;;  %v170_v10 = vld [vmem:[%s806_s25 + $0xa0] sm:$0xff]  ;;  %v172_v11 = vld [vmem:[%s806_s25 + $0xa8] sm:$0xff]  ;;  %169 = vst [vmem:[%s811_s26 + $0x48] sm:$0xff] %v168_v9 }
  0x15   : > { %171 = vst [vmem:[%s811_s26 + $0x50] sm:$0xff] %v170_v10  ;;  %173 = vst [vmem:[%s811_s26 + $0x58] sm:$0xff] %v172_v11  ;;  %v174_v12 = vld [vmem:[%s806_s25 + $0xc0] sm:$0xff]  ;;  %v176_v13 = vld [vmem:[%s806_s25 + $0xc8] sm:$0xff] }
  0x16   : > { %v178_v14 = vld [vmem:[%s806_s25 + $0xe0] sm:$0xff]  ;;  %175 = vst [vmem:[%s811_s26 + $0x60] sm:$0xff] %v174_v12  ;;  %177 = vst [vmem:[%s811_s26 + $0x68] sm:$0xff] %v176_v13  ;;  %v180_v15 = vld [vmem:[%s806_s25 + $0xe8] sm:$0xff] }
  0x17   : > { %179 = vst [vmem:[%s811_s26 + $0x70] sm:$0xff] %v178_v14  ;;  %v182_v16 = vld [vmem:[%s806_s25 + $0x100] sm:$0xff]  ;;  %v184_v17 = vld [vmem:[%s806_s25 + $0x108] sm:$0xff]  ;;  %181 = vst [vmem:[%s811_s26 + $0x78] sm:$0xff] %v180_v15 }
  0x18   : > { %183 = vst [vmem:[%s811_s26 + $0x80] sm:$0xff] %v182_v16  ;;  %185 = vst [vmem:[%s811_s26 + $0x88] sm:$0xff] %v184_v17  ;;  %v186_v18 = vld [vmem:[%s806_s25 + $0x120] sm:$0xff]  ;;  %v188_v19 = vld [vmem:[%s806_s25 + $0x128] sm:$0xff] }
  0x19   : > { %v190_v20 = vld [vmem:[%s806_s25 + $0x140] sm:$0xff]  ;;  %187 = vst [vmem:[%s811_s26 + $0x90] sm:$0xff] %v186_v18  ;;  %189 = vst [vmem:[%s811_s26 + $0x98] sm:$0xff] %v188_v19  ;;  %v192_v21 = vld [vmem:[%s806_s25 + $0x148] sm:$0xff] }
  0x1a   : > { %191 = vst [vmem:[%s811_s26 + $0xa0] sm:$0xff] %v190_v20  ;;  %v194_v22 = vld [vmem:[%s806_s25 + $0x160] sm:$0xff]  ;;  %v196_v23 = vld [vmem:[%s806_s25 + $0x168] sm:$0xff]  ;;  %193 = vst [vmem:[%s811_s26 + $0xa8] sm:$0xff] %v192_v21 }
  0x1b   : > { %195 = vst [vmem:[%s811_s26 + $0xb0] sm:$0xff] %v194_v22  ;;  %197 = vst [vmem:[%s811_s26 + $0xb8] sm:$0xff] %v196_v23  ;;  %v198_v24 = vld [vmem:[%s806_s25 + $0x180] sm:$0xff]  ;;  %v200_v25 = vld [vmem:[%s806_s25 + $0x188] sm:$0xff] }
  0x1c   : > { %v202_v26 = vld [vmem:[%s806_s25 + $0x1a0] sm:$0xff]  ;;  %199 = vst [vmem:[%s811_s26 + $0xc0] sm:$0xff] %v198_v24  ;;  %201 = vst [vmem:[%s811_s26 + $0xc8] sm:$0xff] %v200_v25  ;;  %v204_v27 = vld [vmem:[%s806_s25 + $0x1a8] sm:$0xff] }
  0x1d   : > { %203 = vst [vmem:[%s811_s26 + $0xd0] sm:$0xff] %v202_v26  ;;  %v206_v28 = vld [vmem:[%s806_s25 + $0x1c0] sm:$0xff]  ;;  %v208_v29 = vld [vmem:[%s806_s25 + $0x1c8] sm:$0xff]  ;;  %205 = vst [vmem:[%s811_s26 + $0xd8] sm:$0xff] %v204_v27 }
  0x1e   : > { %207 = vst [vmem:[%s811_s26 + $0xe0] sm:$0xff] %v206_v28  ;;  %209 = vst [vmem:[%s811_s26 + $0xe8] sm:$0xff] %v208_v29  ;;  %v210_v30 = vld [vmem:[%s806_s25 + $0x1e0] sm:$0xff]  ;;  %v212_v31 = vld [vmem:[%s806_s25 + $0x1e8] sm:$0xff] }
  0x1f   : > { %211 = vst [vmem:[%s811_s26 + $0xf0] sm:$0xff] %v210_v30  ;;  %213 = vst [vmem:[%s811_s26 + $0xf8] sm:$0xff] %v212_v31 }
  0x20 PF: > { %p614_p5 = scmp.ge.s32.totalorder %s749_s14, 1  ;;  %p218_p6 = scmp.lt.s32.totalorder %s749_s14, 3 }
  0x22   : > { %p219_p7 = pnand %p614_p5, %p218_p6 }
  0x23   : > { %s225_s27 = sand.u32 (!%p219_p7), 1, %s741_s12   ;;  %s616_s7 = sshll.u32 (!%p219_p7), %s607_s15, 2 }
  0x24   : > { %222 = sbr.rel (%p219_p7) target bundleno = 276 (0x114), region = 51  ;;  %s615_s30 = sshll.u32 (!%p219_p7), %s225_s27, 8 }
  0x25   : > { %s880_s4 = scalar_lea.vmem (!%p219_p7), [#allocation2], %s615_s30  ;;  %p250_p8 = scmp.lt.s32.totalorder (!%p219_p7), %s616_s7, 7 }
  0x29   : > { %v289_v32 = vld [vmem:[%s934_s2] sm:$0xff]  ;;  %v751_v33 = vmov 0   ;;  %v681_v35 = vld [vmem:[%s880_s4 + $0xec] ss:$16 sps:$4 sm:$0xff]   ;;  %v684_v37 = vld [vmem:[%s880_s4 + $0xe8] ss:$16 sps:$4 sm:$0xff]  }
  0x2a   : > { %487 = vmatprep.mubr.bf16.mxu0 %v751_v33  ;;  %528 = vmatprep.mubr.bf16.mxu1 %v751_v33  ;;  %v679_v34 = vld [vmem:[%s880_s4 + $0xe4] ss:$16 sps:$4 sm:$0xff]   ;;  %v683_v36 = vld [vmem:[%s880_s4 + $0xe0] ss:$16 sps:$4 sm:$0xff]   ;;  %v687_v39 = vld [vmem:[%s880_s4 + $0xcc] ss:$16 sps:$4 sm:$0xff]  }
  0x2b   : > { %678 = vset.pattern.permute.xlu0 %v751_v33  ;;  %455 = vmatprep.subr.bf16.mxu0 %v679_v34  ;;  %v685_v38 = vld [vmem:[%s880_s4 + $0xc4] ss:$16 sps:$4 sm:$0xff]   ;;  %v689_v40 = vld [vmem:[%s880_s4 + $0xc0] ss:$16 sps:$4 sm:$0xff]   ;;  %v690_v41 = vld [vmem:[%s880_s4 + $0xc8] ss:$16 sps:$4 sm:$0xff]  }
  0x2c   : > { %292 = vperm.xlu0 %678, %v289_v32   ;;  %496 = vmatprep.subr.bf16.mxu1 %v681_v35  ;;  %v691_v42 = vld [vmem:[%s880_s4 + $0xa4] ss:$16 sps:$4 sm:$0xff]   ;;  %v693_v43 = vld [vmem:[%s880_s4 + $0xac] ss:$16 sps:$4 sm:$0xff]   ;;  %v695_v44 = vld [vmem:[%s880_s4 + $0xa0] ss:$16 sps:$4 sm:$0xff]  }
  0x2d   : > { %456 = vmatpush1.bf16.msra.mxu0 %v683_v36  ;;  %497 = vmatpush1.bf16.msra.mxu1 %v684_v37  ;;  %v696_v45 = vld [vmem:[%s880_s4 + $0xa8] ss:$16 sps:$4 sm:$0xff]   ;;  %v697_v46 = vld [vmem:[%s880_s4 + $0x84] ss:$16 sps:$4 sm:$0xff]   ;;  %v699_v47 = vld [vmem:[%s880_s4 + $0x8c] ss:$16 sps:$4 sm:$0xff]  }
  0x2e   : > { %457 = vmatprep.subr.bf16.mxu0 %v685_v38  ;;  %498 = vmatprep.subr.bf16.mxu1 %v687_v39  ;;  %v701_v48 = vld [vmem:[%s880_s4 + $0x80] ss:$16 sps:$4 sm:$0xff]   ;;  %v702_v49 = vld [vmem:[%s880_s4 + $0x88] ss:$16 sps:$4 sm:$0xff]   ;;  %v703_v50 = vld [vmem:[%s880_s4 + $0x64] ss:$16 sps:$4 sm:$0xff]  }
  0x2f   : > { %v705_v51 = vld [vmem:[%s880_s4 + $0x6c] ss:$16 sps:$4 sm:$0xff]   ;;  %v707_v52 = vld [vmem:[%s880_s4 + $0x60] ss:$16 sps:$4 sm:$0xff]   ;;  %v708_v53 = vld [vmem:[%s880_s4 + $0x68] ss:$16 sps:$4 sm:$0xff]  }
  0x30   : > { %v709_v54 = vld [vmem:[%s880_s4 + $0x44] ss:$16 sps:$4 sm:$0xff]   ;;  %v711_v55 = vld [vmem:[%s880_s4 + $0x4c] ss:$16 sps:$4 sm:$0xff]   ;;  %v713_v56 = vld [vmem:[%s880_s4 + $0x40] ss:$16 sps:$4 sm:$0xff]  }
  0x31   : > { %458 = vmatpush1.bf16.msra.mxu0 %v689_v40  ;;  %499 = vmatpush1.bf16.msra.mxu1 %v690_v41  ;;  %v714_v57 = vld [vmem:[%s880_s4 + $0x48] ss:$16 sps:$4 sm:$0xff]   ;;  %v715_v58 = vld [vmem:[%s880_s4 + $0x24] ss:$16 sps:$4 sm:$0xff]   ;;  %v717_v59 = vld [vmem:[%s880_s4 + $0x2c] ss:$16 sps:$4 sm:$0xff]  }
  0x32   : > { %459 = vmatprep.subr.bf16.mxu0 %v691_v42  ;;  %500 = vmatprep.subr.bf16.mxu1 %v693_v43  ;;  %v719_v60 = vld [vmem:[%s880_s4 + $0x20] ss:$16 sps:$4 sm:$0xff]   ;;  %v720_v61 = vld [vmem:[%s880_s4 + $0x28] ss:$16 sps:$4 sm:$0xff]   ;;  %v721_v62 = vld [vmem:[%s880_s4 + $0x4] ss:$16 sps:$4 sm:$0xff]  }
  0x33   : > { %v723_v63 = vld [vmem:[%s880_s4 + $0xc] ss:$16 sps:$4 sm:$0xff]   ;;  %v725_v0 = vld [vmem:[%s880_s4] ss:$16 sps:$4 sm:$0xff]   ;;  %v726_v1 = vld [vmem:[%s880_s4 + $0x8] ss:$16 sps:$4 sm:$0xff]  }
  0x34   : > { %v256_v2 = vld [vmem:[%s932_s0] sm:$0xf]  ;;  %s940_s7 = smov (!%p250_p8, %s616_s7), 7 }
  0x35   : > { %460 = vmatpush1.bf16.msra.mxu0 %v695_v44  ;;  %501 = vmatpush1.bf16.msra.mxu1 %v696_v45  ;;  %s617_s8 = sshll.u32 %s940_s7, 3 }
  0x36   : > { %461 = vmatprep.subr.bf16.mxu0 %v697_v46  ;;  %502 = vmatprep.subr.bf16.mxu1 %v699_v47  ;;  %s253_s11 = scalar_lea.vmem %s935_s3, %s617_s8 }
  0x39   : > { %462 = vmatpush1.bf16.msra.mxu0 %v701_v48  ;;  %503 = vmatpush1.bf16.msra.mxu1 %v702_v49 }
  0x3a   : > { %463 = vmatprep.subr.bf16.mxu0 %v703_v50  ;;  %504 = vmatprep.subr.bf16.mxu1 %v705_v51 }
  0x3d   : > { %464 = vmatpush1.bf16.msra.mxu0 %v707_v52  ;;  %505 = vmatpush1.bf16.msra.mxu1 %v708_v53 }
  0x3e   : > { %465 = vmatprep.subr.bf16.mxu0 %v709_v54  ;;  %506 = vmatprep.subr.bf16.mxu1 %v711_v55 }
  0x41   : > { %466 = vmatpush1.bf16.msra.mxu0 %v713_v56  ;;  %507 = vmatpush1.bf16.msra.mxu1 %v714_v57 }
  0x42   : > { %467 = vmatprep.subr.bf16.mxu0 %v715_v58  ;;  %508 = vmatprep.subr.bf16.mxu1 %v717_v59 }
  0x45   : > { %468 = vmatpush1.bf16.msra.mxu0 %v719_v60  ;;  %509 = vmatpush1.bf16.msra.mxu1 %v720_v61 }
  0x46   : > { %469 = vmatprep.subr.bf16.mxu0 %v721_v62  ;;  %510 = vmatprep.subr.bf16.mxu1 %v723_v63 }
  0x49   : > { %470 = vmatpush1.bf16.msra.mxu0 %v725_v0  ;;  %511 = vmatpush1.bf16.msra.mxu1 %v726_v1 }
  0x4c   : > { %488 = vmatmul.mubr.bf16.vlgmr.msra.gmra.mxu0 %v256_v2  ;;  %529 = vmatmul.mubr.bf16.vlgmr.msra.gmra.mxu1 %v256_v2 }
  0xa7   : > { %v293_v3 = vpop.permute.xlu0 %292 }
 0x10c   : > { %v489_v4 = vpop.f32.mrf.mxu0  ;;  %v530_v5 = vpop.f32.mrf.mxu1 }
 0x10d   : > { %v490_v6 = vadd.f32 %v489_v4, %v293_v3  ;;  %v531_v7 = vadd.f32 %v530_v5, %v293_v3 }
 0x10e   : > { %v491_v8 = vpop.f32.mrf.mxu0  ;;  %v532_v9 = vpop.f32.mrf.mxu1 }
 0x10f   : > { %v537_v10 = vmax.f32 %v490_v6, 0.0  ;;  %v492_v11 = vadd.f32 %v491_v8, %v293_v3  ;;  %v533_v12 = vadd.f32 %v532_v9, %v293_v3  ;;  %v539_v16 = vmax.f32 %v531_v7, 0.0 }
 0x110   : > { %v493_v13 = vpop.f32.mrf.mxu0  ;;  %v534_v14 = vpop.f32.mrf.mxu1 }
 0x111   : > { %541 = vst [vmem:[%s253_s11] sm:$0xff] %v537_v10  ;;  %v538_v15 = vmax.f32 %v492_v11, 0.0  ;;  %v540_v19 = vmax.f32 %v533_v12, 0.0  ;;  %543 = vst [vmem:[%s253_s11 + $0x10] sm:$0xff] %v539_v16 }
 0x112   : > { %v494_v17 = vpop.f32.mrf.mxu0  ;;  %v535_v18 = vpop.f32.mrf.mxu1 }
 0x113   : > { %542 = vst [vmem:[%s253_s11 + $0x8] sm:$0xff] %v538_v15  ;;  %544 = vst [vmem:[%s253_s11 + $0x18] sm:$0xff] %v540_v19 }
 0x114 PF: > { %p10_p9 = scmp.ge.s32.totalorder %s789_s16, 4   ;;  %s936_s12 = smov %s745_s13 }
 0x115   : > { %s937_s13 = smov %s798_s19  ;;  %s938_s14 = smov %s789_s16 }
 0x116   :  { %12 = sbr.rel (!%p10_p9) target bundleno = 2 (0x2), region = 90 }

</bundles_post_ra>
